<compile_context>
chip_gen: v7x
topology: tpu7x:2x2x1
jax: 0.10.0
libtpu: 0.0.40
codegen_flags: <defaults>
</compile_context>

<pallas_src>
import jax
import jax.numpy as jnp
from jax import lax
from jax.experimental import pallas as pl
from jax.experimental.pallas import tpu as pltpu


def _make_kernel(img_h, img_w, c_in, c_in_pad, c_out, bt):
    P = img_h * img_w
    pad_w = img_w + 1  # halo wide enough for the largest flat shift (W + 1)

    def kernel(x_ref, sin_ref, tin_ref, w_ref, bout_ref, prelu_ref, o_ref):
        # x_ref   : (bt, c_in, P)        f32
        # sin/tin : (c_in, 1)            f32   BN_in folded scale / shift
        # w_ref   : (c_out, 9*c_in_pad)  bf16  fused conv taps (BN_out scale folded)
        # bout    : (c_out, 1)           f32   conv_bias * s_out + BN_out shift
        # prelu   : (2,)                 f32   SMEM scalars [slope_in, slope_out]
        # o_ref   : (bt, c_out, P)       f32
        alpha_in = prelu_ref[0]
        alpha_out = prelu_ref[1]
        w = w_ref[...]          # (c_out, 9*Cp) bf16, loaded once per grid step
        bout = bout_ref[...]    # (c_out, 1)
        sin = sin_ref[...]
        tin = tin_ref[...]

        # Hoisted: column index of every flattened pixel and the two
        # column-validity masks (shared by all taps / all images in the tile).
        col = lax.broadcasted_iota(jnp.int32, (1, P), 1) % img_w
        mask_l = col >= 1              # valid lanes for dx = -1
        mask_r = col <= img_w - 2      # valid lanes for dx = +1

        for bi in range(bt):           # unrolled batch tile
            x = x_ref[bi]              # (c_in, P)

            # BatchNorm(in) folded to scale/shift, then PReLU(in).
            a = x * sin + tin
            a = jnp.where(a >= 0.0, a, alpha_in * a)
            # Dropout2d(p=0.5) is the identity in eval mode.

            # Pad channels up to Cp (sublane alignment of the im2col stack).
            if c_in_pad > c_in:
                a = jnp.concatenate(
                    [a, jnp.zeros((c_in_pad - c_in, P), a.dtype)], axis=0)

            # Single zero halo on the flattened pixel axis; every tap is then a
            # static lane slice of this one buffer (no per-tap concat-with-zeros).
            apad = jnp.concatenate(
                [jnp.zeros((c_in_pad, pad_w), a.dtype),
                 a,
                 jnp.zeros((c_in_pad, pad_w), a.dtype)], axis=1)

            pieces = []
            for dy in (-1, 0, 1):
                for dx in (-1, 0, 1):
                    s = dy * img_w + dx                       # flat pixel shift
                    sh = apad[:, pad_w + s: pad_w + s + P]    # (Cp, P)
                    if dx == -1:
                        sh = jnp.where(mask_l, sh, 0.0)
                    elif dx == 1:
                        sh = jnp.where(mask_r, sh, 0.0)
                    pieces.append(sh)

            # im2col stack: (9*Cp, P); single deep-K MXU matmul in bf16,
            # f32 accumulation.
            stack = jnp.concatenate(pieces, axis=0).astype(jnp.bfloat16)
            z = jnp.dot(w, stack, preferred_element_type=jnp.float32)  # (c_out, P)

            # Conv bias + BatchNorm(out) shift, then PReLU(out).
            z = z + bout
            z = jnp.where(z >= 0.0, z, alpha_out * z)
            o_ref[bi] = z.astype(o_ref.dtype)

    return kernel


def conv_module_end(x, params, *, eps=1e-5):
    """x: (B, C_in, H, W) -> (B, C_out, H, W), inference-mode ConvModuleEnd."""
    B, C_in, H, W = x.shape
    C_out = params["conv_w"].shape[0]
    P = H * W
    f32 = jnp.float32
    Cp = ((C_in + 7) // 8) * 8          # pad contraction channels to sublane multiple

    # Fold the BatchNorms (running stats) into per-channel scale/shift; fold
    # BN_out scale into the conv weights and (conv bias + BN_out shift) into
    # a single bias vector.
    s_in = params["bn_in_gamma"] / jnp.sqrt(params["bn_in_var"] + eps)
    t_in = params["bn_in_beta"] - params["bn_in_mean"] * s_in
    s_out = params["bn_out_gamma"] / jnp.sqrt(params["bn_out_var"] + eps)
    t_out = params["bn_out_beta"] - params["bn_out_mean"] * s_out

    w_fold = params["conv_w"] * s_out[:, None, None, None]       # (C_out, C_in, 3, 3)
    b_fold = params["conv_b"] * s_out + t_out                    # (C_out,)

    # (ky, kx, C_out, C_in) -> (9, C_out, Cp) -> fused slab (C_out, 9*Cp),
    # K index = tap*Cp + c, tap = (dy+1)*3 + (dx+1). Weights in bf16 (MXU rate).
    w_taps = jnp.transpose(w_fold, (2, 3, 0, 1)).reshape(9, C_out, C_in)
    w_taps = jnp.pad(w_taps, ((0, 0), (0, 0), (0, Cp - C_in)))
    w_slab = jnp.transpose(w_taps, (1, 0, 2)).reshape(C_out, 9 * Cp)
    w_slab = w_slab.astype(jnp.bfloat16)

    x_flat = x.reshape(B, C_in, P).astype(f32)
    sin = s_in.reshape(C_in, 1).astype(f32)
    tin = t_in.reshape(C_in, 1).astype(f32)
    bout = b_fold.reshape(C_out, 1).astype(f32)
    prelu = jnp.stack([jnp.asarray(params["prelu_in"], dtype=f32),
                       jnp.asarray(params["prelu_out"], dtype=f32)])   # (2,) SMEM

    # Batch tile: largest divisor of B that is <= 8, so each grid step does
    # several images worth of work (amortizes the ~0.35us/step overhead).
    Bt = 1
    for cand in range(min(B, 8), 0, -1):
        if B % cand == 0:
            Bt = cand
            break

    kernel = _make_kernel(H, W, C_in, Cp, C_out, Bt)
    out = pl.pallas_call(
        kernel,
        out_shape=jax.ShapeDtypeStruct((B, C_out, P), f32),
        grid_spec=pltpu.PrefetchScalarGridSpec(
            num_scalar_prefetch=0,
            grid=(B // Bt,),
            in_specs=[
                pl.BlockSpec((Bt, C_in, P), lambda b: (b, 0, 0)),
                pl.BlockSpec((C_in, 1), lambda b: (0, 0)),
                pl.BlockSpec((C_in, 1), lambda b: (0, 0)),
                pl.BlockSpec((C_out, 9 * Cp), lambda b: (0, 0)),
                pl.BlockSpec((C_out, 1), lambda b: (0, 0)),
                pl.BlockSpec(memory_space=pltpu.MemorySpace.SMEM),
            ],
            out_specs=pl.BlockSpec((Bt, C_out, P), lambda b: (b, 0, 0)),
        ),
        compiler_params=pltpu.CompilerParams(
            dimension_semantics=("parallel",),
            # Tiny working set here; for production shapes re-derive the P-tile
            # and this limit per generation (v7x: 64 MiB physical VMEM).
            vmem_limit_bytes=32 * 1024 * 1024),
    )(x_flat, sin, tin, w_slab, bout, prelu)
    return out.reshape(B, C_out, H, W)


def _reference(x, p, *, eps=1e-5):
    def bn(v, gamma, beta, mean, var):
        return ((v - mean[None, :, None, None])
                / jnp.sqrt(var + eps)[None, :, None, None]
                * gamma[None, :, None, None] + beta[None, :, None, None])

    a = bn(x, p["bn_in_gamma"], p["bn_in_beta"], p["bn_in_mean"], p["bn_in_var"])
    a = jnp.where(a >= 0, a, p["prelu_in"] * a)
    # Dropout2d identity in eval mode.
    z = lax.conv_general_dilated(a, p["conv_w"], window_strides=(1, 1),
                                 padding=((1, 1), (1, 1)),
                                 dimension_numbers=("NCHW", "OIHW", "NCHW"))
    z = z + p["conv_b"][None, :, None, None]
    z = bn(z, p["bn_out_gamma"], p["bn_out_beta"], p["bn_out_mean"], p["bn_out_var"])
    z = jnp.where(z >= 0, z, p["prelu_out"] * z)
    return z


if __name__ == "__main__":
    B, C_in, C_out, H, W = 2, 4, 4, 16, 16
    key = jax.random.PRNGKey(0)
    ks = jax.random.split(key, 12)

    x = jax.random.normal(ks[0], (B, C_in, H, W), dtype=jnp.float32)
    params = {
        "bn_in_gamma": jax.random.uniform(ks[1], (C_in,), minval=0.5, maxval=1.5),
        "bn_in_beta": 0.1 * jax.random.normal(ks[2], (C_in,)),
        "bn_in_mean": 0.1 * jax.random.normal(ks[3], (C_in,)),
        "bn_in_var": jax.random.uniform(ks[4], (C_in,), minval=0.5, maxval=1.5),
        "prelu_in": jnp.float32(0.25),                 # PyTorch PReLU default init
        "conv_w": 0.1 * jax.random.normal(ks[5], (C_out, C_in, 3, 3)),
        "conv_b": 0.1 * jax.random.normal(ks[6], (C_out,)),
        "bn_out_gamma": jax.random.uniform(ks[7], (C_out,), minval=0.5, maxval=1.5),
        "bn_out_beta": 0.1 * jax.random.normal(ks[8], (C_out,)),
        "bn_out_mean": 0.1 * jax.random.normal(ks[9], (C_out,)),
        "bn_out_var": jax.random.uniform(ks[10], (C_out,), minval=0.5, maxval=1.5),
        "prelu_out": jnp.float32(0.25),
    }

    y = conv_module_end(x, params)
    jax.block_until_ready(y)

    ref = _reference(x, params)
    assert y.shape == (B, C_out, H, W)
    # bf16 MXU operands (f32 accumulation) -> tolerance relaxed vs pure-f32.
    assert jnp.allclose(y, ref, atol=5e-2, rtol=5e-2), float(jnp.max(jnp.abs(y - ref)))

    print("KERNEL_OK")
</pallas_src>

<mosaic_0001>
module attributes {stable_mosaic.version = 11 : i64} {
  func.func @kernel(%arg0: i32, %arg1: memref<2x4x256xf32, #tpu.memory_space<vmem>>, %arg2: memref<4x1xf32, #tpu.memory_space<vmem>>, %arg3: memref<4x1xf32, #tpu.memory_space<vmem>>, %arg4: memref<4x72xbf16, #tpu.memory_space<vmem>>, %arg5: memref<4x1xf32, #tpu.memory_space<vmem>>, %arg6: memref<2xf32, #tpu.memory_space<smem>>, %arg7: memref<2x4x256xf32, #tpu.memory_space<vmem>>) attributes {dimension_semantics = [#tpu.dimension_semantics<parallel>], iteration_bounds = array<i64: 1>, scalar_prefetch = 0 : i64, scratch_operands = 0 : i64, tpu.core_type = #tpu.core_type<tc>, window_params = [{transform_indices = @transform_0, window_bounds = array<i64: 2, 4, 256>}, {pipeline_mode = #tpu.pipeline_mode<synchronous>, transform_indices = @transform_1, window_bounds = array<i64: 4, 1>}, {pipeline_mode = #tpu.pipeline_mode<synchronous>, transform_indices = @transform_2, window_bounds = array<i64: 4, 1>}, {pipeline_mode = #tpu.pipeline_mode<synchronous>, transform_indices = @transform_3, window_bounds = array<i64: 4, 72>}, {pipeline_mode = #tpu.pipeline_mode<synchronous>, transform_indices = @transform_4, window_bounds = array<i64: 4, 1>}, {transform_indices = @transform_5, window_bounds = array<i64: 2>}, {transform_indices = @transform_6, window_bounds = array<i64: 2, 4, 256>}]} {
    %c0 = arith.constant 0 : index
    %0 = memref.load %arg6[%c0] : memref<2xf32, #tpu.memory_space<smem>>
    %c1 = arith.constant 1 : index
    %1 = memref.load %arg6[%c1] : memref<2xf32, #tpu.memory_space<smem>>
    %c0_0 = arith.constant 0 : index
    %c0_1 = arith.constant 0 : index
    %2 = vector.load %arg4[%c0_0, %c0_1] : memref<4x72xbf16, #tpu.memory_space<vmem>>, vector<4x72xbf16>
    %c0_2 = arith.constant 0 : index
    %c0_3 = arith.constant 0 : index
    %3 = vector.load %arg5[%c0_2, %c0_3] : memref<4x1xf32, #tpu.memory_space<vmem>>, vector<4x1xf32>
    %c0_4 = arith.constant 0 : index
    %c0_5 = arith.constant 0 : index
    %4 = vector.load %arg2[%c0_4, %c0_5] : memref<4x1xf32, #tpu.memory_space<vmem>>, vector<4x1xf32>
    %c0_6 = arith.constant 0 : index
    %c0_7 = arith.constant 0 : index
    %5 = vector.load %arg3[%c0_6, %c0_7] : memref<4x1xf32, #tpu.memory_space<vmem>>, vector<4x1xf32>
    %6 = tpu.iota {dimensions = array<i32: 1>} : vector<1x256xi32>
    %c16_i32 = arith.constant 16 : i32
    %c0_i32 = arith.constant 0 : i32
    %7 = arith.cmpi eq, %c16_i32, %c0_i32 : i32
    %c1_i32 = arith.constant 1 : i32
    %8 = arith.select %7, %c1_i32, %c16_i32 : i32
    %9 = vector.broadcast %8 : i32 to vector<1x256xi32>
    %10 = arith.remsi %6, %9 : vector<1x256xi32>
    %c0_i32_8 = arith.constant 0 : i32
    %11 = vector.broadcast %c0_i32_8 : i32 to vector<1x256xi32>
    %12 = arith.cmpi ne, %10, %11 : vector<1x256xi32>
    %c0_i32_9 = arith.constant 0 : i32
    %13 = vector.broadcast %c0_i32_9 : i32 to vector<1x256xi32>
    %14 = arith.cmpi slt, %10, %13 : vector<1x256xi32>
    %c0_i32_10 = arith.constant 0 : i32
    %15 = arith.cmpi slt, %8, %c0_i32_10 : i32
    %16 = vector.broadcast %15 : i1 to vector<1x256xi1>
    %17 = vector.broadcast %16 : vector<1x256xi1> to vector<1x256xi1>
    %18 = arith.xori %14, %17 : vector<1x256xi1>
    %19 = arith.andi %18, %12 : vector<1x256xi1>
    %20 = vector.broadcast %8 : i32 to vector<1x256xi32>
    %21 = arith.addi %10, %20 : vector<1x256xi32>
    %22 = arith.select %19, %21, %10 : vector<1x256xi1>, vector<1x256xi32>
    %c1_i32_11 = arith.constant 1 : i32
    %23 = vector.broadcast %c1_i32_11 : i32 to vector<1x256xi32>
    %24 = arith.cmpi sge, %22, %23 : vector<1x256xi32>
    %c14_i32 = arith.constant 14 : i32
    %25 = vector.broadcast %c14_i32 : i32 to vector<1x256xi32>
    %26 = arith.cmpi sle, %22, %25 : vector<1x256xi32>
    %c0_12 = arith.constant 0 : index
    %c0_13 = arith.constant 0 : index
    %c0_14 = arith.constant 0 : index
    %27 = vector.load %arg1[%c0_12, %c0_13, %c0_14] : memref<2x4x256xf32, #tpu.memory_space<vmem>>, vector<1x4x256xf32>
    %28 = vector.shape_cast %27 : vector<1x4x256xf32> to vector<4x256xf32>
    %29 = vector.broadcast %4 : vector<4x1xf32> to vector<4x256xf32>
    %30 = arith.mulf %28, %29 : vector<4x256xf32>
    %31 = vector.broadcast %5 : vector<4x1xf32> to vector<4x256xf32>
    %32 = arith.addf %30, %31 : vector<4x256xf32>
    %cst = arith.constant 0.000000e+00 : f32
    %33 = vector.broadcast %cst : f32 to vector<4x256xf32>
    %34 = arith.cmpf oge, %32, %33 : vector<4x256xf32>
    %35 = vector.broadcast %0 : f32 to vector<4x256xf32>
    %36 = arith.mulf %35, %32 : vector<4x256xf32>
    %37 = arith.select %34, %32, %36 : vector<4x256xi1>, vector<4x256xf32>
    %cst_15 = arith.constant 0.000000e+00 : f32
    %38 = vector.broadcast %cst_15 : f32 to vector<4x256xf32>
    %39 = tpu.concatenate %37, %38 in 0 : vector<4x256xf32>, vector<4x256xf32> -> vector<8x256xf32>
    %cst_16 = arith.constant 0.000000e+00 : f32
    %40 = vector.broadcast %cst_16 : f32 to vector<8x17xf32>
    %cst_17 = arith.constant 0.000000e+00 : f32
    %41 = vector.broadcast %cst_17 : f32 to vector<8x17xf32>
    %42 = tpu.concatenate %40, %39, %41 in 1 : vector<8x17xf32>, vector<8x256xf32>, vector<8x17xf32> -> vector<8x290xf32>
    %43 = vector.extract_strided_slice %42 {offsets = [0, 0], sizes = [8, 256], strides = [1, 1]} : vector<8x290xf32> to vector<8x256xf32>
    %cst_18 = arith.constant 0.000000e+00 : f32
    %44 = vector.shape_cast %24 : vector<1x256xi1> to vector<1x256xi1>
    %45 = vector.broadcast %44 : vector<1x256xi1> to vector<8x256xi1>
    %46 = vector.broadcast %cst_18 : f32 to vector<8x256xf32>
    %47 = arith.select %45, %43, %46 : vector<8x256xi1>, vector<8x256xf32>
    %48 = vector.extract_strided_slice %42 {offsets = [0, 1], sizes = [8, 256], strides = [1, 1]} : vector<8x290xf32> to vector<8x256xf32>
    %49 = vector.extract_strided_slice %42 {offsets = [0, 2], sizes = [8, 256], strides = [1, 1]} : vector<8x290xf32> to vector<8x256xf32>
    %cst_19 = arith.constant 0.000000e+00 : f32
    %50 = vector.shape_cast %26 : vector<1x256xi1> to vector<1x256xi1>
    %51 = vector.broadcast %50 : vector<1x256xi1> to vector<8x256xi1>
    %52 = vector.broadcast %cst_19 : f32 to vector<8x256xf32>
    %53 = arith.select %51, %49, %52 : vector<8x256xi1>, vector<8x256xf32>
    %54 = vector.extract_strided_slice %42 {offsets = [0, 16], sizes = [8, 256], strides = [1, 1]} : vector<8x290xf32> to vector<8x256xf32>
    %cst_20 = arith.constant 0.000000e+00 : f32
    %55 = vector.shape_cast %24 : vector<1x256xi1> to vector<1x256xi1>
    %56 = vector.broadcast %55 : vector<1x256xi1> to vector<8x256xi1>
    %57 = vector.broadcast %cst_20 : f32 to vector<8x256xf32>
    %58 = arith.select %56, %54, %57 : vector<8x256xi1>, vector<8x256xf32>
    %59 = vector.extract_strided_slice %42 {offsets = [0, 17], sizes = [8, 256], strides = [1, 1]} : vector<8x290xf32> to vector<8x256xf32>
    %60 = vector.extract_strided_slice %42 {offsets = [0, 18], sizes = [8, 256], strides = [1, 1]} : vector<8x290xf32> to vector<8x256xf32>
    %cst_21 = arith.constant 0.000000e+00 : f32
    %61 = vector.shape_cast %26 : vector<1x256xi1> to vector<1x256xi1>
    %62 = vector.broadcast %61 : vector<1x256xi1> to vector<8x256xi1>
    %63 = vector.broadcast %cst_21 : f32 to vector<8x256xf32>
    %64 = arith.select %62, %60, %63 : vector<8x256xi1>, vector<8x256xf32>
    %65 = vector.extract_strided_slice %42 {offsets = [0, 32], sizes = [8, 256], strides = [1, 1]} : vector<8x290xf32> to vector<8x256xf32>
    %cst_22 = arith.constant 0.000000e+00 : f32
    %66 = vector.shape_cast %24 : vector<1x256xi1> to vector<1x256xi1>
    %67 = vector.broadcast %66 : vector<1x256xi1> to vector<8x256xi1>
    %68 = vector.broadcast %cst_22 : f32 to vector<8x256xf32>
    %69 = arith.select %67, %65, %68 : vector<8x256xi1>, vector<8x256xf32>
    %70 = vector.extract_strided_slice %42 {offsets = [0, 33], sizes = [8, 256], strides = [1, 1]} : vector<8x290xf32> to vector<8x256xf32>
    %71 = vector.extract_strided_slice %42 {offsets = [0, 34], sizes = [8, 256], strides = [1, 1]} : vector<8x290xf32> to vector<8x256xf32>
    %cst_23 = arith.constant 0.000000e+00 : f32
    %72 = vector.shape_cast %26 : vector<1x256xi1> to vector<1x256xi1>
    %73 = vector.broadcast %72 : vector<1x256xi1> to vector<8x256xi1>
    %74 = vector.broadcast %cst_23 : f32 to vector<8x256xf32>
    %75 = arith.select %73, %71, %74 : vector<8x256xi1>, vector<8x256xf32>
    %76 = tpu.concatenate %47, %48, %53, %58, %59, %64, %69, %70, %75 in 0 : vector<8x256xf32>, vector<8x256xf32>, vector<8x256xf32>, vector<8x256xf32>, vector<8x256xf32>, vector<8x256xf32>, vector<8x256xf32>, vector<8x256xf32>, vector<8x256xf32> -> vector<72x256xf32>
    %77 = arith.truncf %76 : vector<72x256xf32> to vector<72x256xbf16>
    %cst_24 = arith.constant dense<0.000000e+00> : vector<4x256xf32>
    %78 = tpu.matmul %2, %77, %cst_24 {dimension_numbers = #tpu.dot_dimension_numbers<[1], [0], [0], [1], [0, 0, 1, 1], [], []>} : vector<4x72xbf16>, vector<72x256xbf16>, vector<4x256xf32> -> vector<4x256xf32>
    %79 = vector.broadcast %3 : vector<4x1xf32> to vector<4x256xf32>
    %80 = arith.addf %78, %79 : vector<4x256xf32>
    %cst_25 = arith.constant 0.000000e+00 : f32
    %81 = vector.broadcast %cst_25 : f32 to vector<4x256xf32>
    %82 = arith.cmpf oge, %80, %81 : vector<4x256xf32>
    %83 = vector.broadcast %1 : f32 to vector<4x256xf32>
    %84 = arith.mulf %83, %80 : vector<4x256xf32>
    %85 = arith.select %82, %80, %84 : vector<4x256xi1>, vector<4x256xf32>
    %c0_26 = arith.constant 0 : index
    %c0_27 = arith.constant 0 : index
    %c0_28 = arith.constant 0 : index
    %86 = vector.load %arg7[%c0_26, %c0_27, %c0_28] : memref<2x4x256xf32, #tpu.memory_space<vmem>>, vector<1x4x256xf32>
    %87 = vector.shape_cast %86 : vector<1x4x256xf32> to vector<4x256xf32>
    %88 = vector.shape_cast %85 : vector<4x256xf32> to vector<1x4x256xf32>
    tpu.vector_store %arg7[%c0_26, %c0_27, %c0_28], %88 {strides = array<i32>} : memref<2x4x256xf32, #tpu.memory_space<vmem>>, vector<1x4x256xf32>,
    %c1_29 = arith.constant 1 : index
    %c0_30 = arith.constant 0 : index
    %c0_31 = arith.constant 0 : index
    %89 = vector.load %arg1[%c1_29, %c0_30, %c0_31] : memref<2x4x256xf32, #tpu.memory_space<vmem>>, vector<1x4x256xf32>
    %90 = vector.shape_cast %89 : vector<1x4x256xf32> to vector<4x256xf32>
    %91 = vector.broadcast %4 : vector<4x1xf32> to vector<4x256xf32>
    %92 = arith.mulf %90, %91 : vector<4x256xf32>
    %93 = vector.broadcast %5 : vector<4x1xf32> to vector<4x256xf32>
    %94 = arith.addf %92, %93 : vector<4x256xf32>
    %cst_32 = arith.constant 0.000000e+00 : f32
    %95 = vector.broadcast %cst_32 : f32 to vector<4x256xf32>
    %96 = arith.cmpf oge, %94, %95 : vector<4x256xf32>
    %97 = vector.broadcast %0 : f32 to vector<4x256xf32>
    %98 = arith.mulf %97, %94 : vector<4x256xf32>
    %99 = arith.select %96, %94, %98 : vector<4x256xi1>, vector<4x256xf32>
    %cst_33 = arith.constant 0.000000e+00 : f32
    %100 = vector.broadcast %cst_33 : f32 to vector<4x256xf32>
    %101 = tpu.concatenate %99, %100 in 0 : vector<4x256xf32>, vector<4x256xf32> -> vector<8x256xf32>
    %cst_34 = arith.constant 0.000000e+00 : f32
    %102 = vector.broadcast %cst_34 : f32 to vector<8x17xf32>
    %cst_35 = arith.constant 0.000000e+00 : f32
    %103 = vector.broadcast %cst_35 : f32 to vector<8x17xf32>
    %104 = tpu.concatenate %102, %101, %103 in 1 : vector<8x17xf32>, vector<8x256xf32>, vector<8x17xf32> -> vector<8x290xf32>
    %105 = vector.extract_strided_slice %104 {offsets = [0, 0], sizes = [8, 256], strides = [1, 1]} : vector<8x290xf32> to vector<8x256xf32>
    %cst_36 = arith.constant 0.000000e+00 : f32
    %106 = vector.shape_cast %24 : vector<1x256xi1> to vector<1x256xi1>
    %107 = vector.broadcast %106 : vector<1x256xi1> to vector<8x256xi1>
    %108 = vector.broadcast %cst_36 : f32 to vector<8x256xf32>
    %109 = arith.select %107, %105, %108 : vector<8x256xi1>, vector<8x256xf32>
    %110 = vector.extract_strided_slice %104 {offsets = [0, 1], sizes = [8, 256], strides = [1, 1]} : vector<8x290xf32> to vector<8x256xf32>
    %111 = vector.extract_strided_slice %104 {offsets = [0, 2], sizes = [8, 256], strides = [1, 1]} : vector<8x290xf32> to vector<8x256xf32>
    %cst_37 = arith.constant 0.000000e+00 : f32
    %112 = vector.shape_cast %26 : vector<1x256xi1> to vector<1x256xi1>
    %113 = vector.broadcast %112 : vector<1x256xi1> to vector<8x256xi1>
    %114 = vector.broadcast %cst_37 : f32 to vector<8x256xf32>
    %115 = arith.select %113, %111, %114 : vector<8x256xi1>, vector<8x256xf32>
    %116 = vector.extract_strided_slice %104 {offsets = [0, 16], sizes = [8, 256], strides = [1, 1]} : vector<8x290xf32> to vector<8x256xf32>
    %cst_38 = arith.constant 0.000000e+00 : f32
    %117 = vector.shape_cast %24 : vector<1x256xi1> to vector<1x256xi1>
    %118 = vector.broadcast %117 : vector<1x256xi1> to vector<8x256xi1>
    %119 = vector.broadcast %cst_38 : f32 to vector<8x256xf32>
    %120 = arith.select %118, %116, %119 : vector<8x256xi1>, vector<8x256xf32>
    %121 = vector.extract_strided_slice %104 {offsets = [0, 17], sizes = [8, 256], strides = [1, 1]} : vector<8x290xf32> to vector<8x256xf32>
    %122 = vector.extract_strided_slice %104 {offsets = [0, 18], sizes = [8, 256], strides = [1, 1]} : vector<8x290xf32> to vector<8x256xf32>
    %cst_39 = arith.constant 0.000000e+00 : f32
    %123 = vector.shape_cast %26 : vector<1x256xi1> to vector<1x256xi1>
    %124 = vector.broadcast %123 : vector<1x256xi1> to vector<8x256xi1>
    %125 = vector.broadcast %cst_39 : f32 to vector<8x256xf32>
    %126 = arith.select %124, %122, %125 : vector<8x256xi1>, vector<8x256xf32>
    %127 = vector.extract_strided_slice %104 {offsets = [0, 32], sizes = [8, 256], strides = [1, 1]} : vector<8x290xf32> to vector<8x256xf32>
    %cst_40 = arith.constant 0.000000e+00 : f32
    %128 = vector.shape_cast %24 : vector<1x256xi1> to vector<1x256xi1>
    %129 = vector.broadcast %128 : vector<1x256xi1> to vector<8x256xi1>
    %130 = vector.broadcast %cst_40 : f32 to vector<8x256xf32>
    %131 = arith.select %129, %127, %130 : vector<8x256xi1>, vector<8x256xf32>
    %132 = vector.extract_strided_slice %104 {offsets = [0, 33], sizes = [8, 256], strides = [1, 1]} : vector<8x290xf32> to vector<8x256xf32>
    %133 = vector.extract_strided_slice %104 {offsets = [0, 34], sizes = [8, 256], strides = [1, 1]} : vector<8x290xf32> to vector<8x256xf32>
    %cst_41 = arith.constant 0.000000e+00 : f32
    %134 = vector.shape_cast %26 : vector<1x256xi1> to vector<1x256xi1>
    %135 = vector.broadcast %134 : vector<1x256xi1> to vector<8x256xi1>
    %136 = vector.broadcast %cst_41 : f32 to vector<8x256xf32>
    %137 = arith.select %135, %133, %136 : vector<8x256xi1>, vector<8x256xf32>
    %138 = tpu.concatenate %109, %110, %115, %120, %121, %126, %131, %132, %137 in 0 : vector<8x256xf32>, vector<8x256xf32>, vector<8x256xf32>, vector<8x256xf32>, vector<8x256xf32>, vector<8x256xf32>, vector<8x256xf32>, vector<8x256xf32>, vector<8x256xf32> -> vector<72x256xf32>
    %139 = arith.truncf %138 : vector<72x256xf32> to vector<72x256xbf16>
    %cst_42 = arith.constant dense<0.000000e+00> : vector<4x256xf32>
    %140 = tpu.matmul %2, %139, %cst_42 {dimension_numbers = #tpu.dot_dimension_numbers<[1], [0], [0], [1], [0, 0, 1, 1], [], []>} : vector<4x72xbf16>, vector<72x256xbf16>, vector<4x256xf32> -> vector<4x256xf32>
    %141 = vector.broadcast %3 : vector<4x1xf32> to vector<4x256xf32>
    %142 = arith.addf %140, %141 : vector<4x256xf32>
    %cst_43 = arith.constant 0.000000e+00 : f32
    %143 = vector.broadcast %cst_43 : f32 to vector<4x256xf32>
    %144 = arith.cmpf oge, %142, %143 : vector<4x256xf32>
    %145 = vector.broadcast %1 : f32 to vector<4x256xf32>
    %146 = arith.mulf %145, %142 : vector<4x256xf32>
    %147 = arith.select %144, %142, %146 : vector<4x256xi1>, vector<4x256xf32>
    %c1_44 = arith.constant 1 : index
    %c0_45 = arith.constant 0 : index
    %c0_46 = arith.constant 0 : index
    %148 = vector.load %arg7[%c1_44, %c0_45, %c0_46] : memref<2x4x256xf32, #tpu.memory_space<vmem>>, vector<1x4x256xf32>
    %149 = vector.shape_cast %148 : vector<1x4x256xf32> to vector<4x256xf32>
    %150 = vector.shape_cast %147 : vector<4x256xf32> to vector<1x4x256xf32>
    tpu.vector_store %arg7[%c1_44, %c0_45, %c0_46], %150 {strides = array<i32>} : memref<2x4x256xf32, #tpu.memory_space<vmem>>, vector<1x4x256xf32>,
    return
  }
  func.func @transform_0(%arg0: i32) -> (i32, i32, i32) {
    %c0_i32 = arith.constant 0 : i32
    %c0_i32_0 = arith.constant 0 : i32
    %c0_i32_1 = arith.constant 0 : i32
    return %arg0, %c0_i32, %c0_i32_0 : i32, i32, i32
  }
  func.func @transform_1(%arg0: i32) -> (i32, i32) {
    %c0_i32 = arith.constant 0 : i32
    %c0_i32_0 = arith.constant 0 : i32
    %c0_i32_1 = arith.constant 0 : i32
    return %c0_i32, %c0_i32_0 : i32, i32
  }
  func.func @transform_2(%arg0: i32) -> (i32, i32) {
    %c0_i32 = arith.constant 0 : i32
    %c0_i32_0 = arith.constant 0 : i32
    %c0_i32_1 = arith.constant 0 : i32
    return %c0_i32, %c0_i32_0 : i32, i32
  }
  func.func @transform_3(%arg0: i32) -> (i32, i32) {
    %c0_i32 = arith.constant 0 : i32
    %c0_i32_0 = arith.constant 0 : i32
    %c0_i32_1 = arith.constant 0 : i32
    return %c0_i32, %c0_i32_0 : i32, i32
  }
  func.func @transform_4(%arg0: i32) -> (i32, i32) {
    %c0_i32 = arith.constant 0 : i32
    %c0_i32_0 = arith.constant 0 : i32
    %c0_i32_1 = arith.constant 0 : i32
    return %c0_i32, %c0_i32_0 : i32, i32
  }
  func.func @transform_5(%arg0: i32) -> i32 {
    %c0_i32 = arith.constant 0 : i32
    %c0_i32_0 = arith.constant 0 : i32
    return %c0_i32 : i32
  }
  func.func @transform_6(%arg0: i32) -> (i32, i32, i32) {
    %c0_i32 = arith.constant 0 : i32
    %c0_i32_0 = arith.constant 0 : i32
    %c0_i32_1 = arith.constant 0 : i32
    return %arg0, %c0_i32, %c0_i32_0 : i32, i32, i32
  }
}

</mosaic_0001>

<bundles_post_ra>
// kernel: tpu_custom_call.1
= control target key start
LH: loop header
LB: loop body
LE: loop exit
PB: predicated region body
PF: predicated region fallthrough
CT: control target
= control target key end

     0   :  { %11 = vsyncpa [#allocation3], 0  ;;  %s1087_s0 = inlined_call_operand.hbm [shape: f32[2,4,256], index: 0, kind: input, shape index: {}]   ;;  %s1088_s1 = inlined_call_operand.vmem [shape: f32[4,1], index: 1, kind: input, shape index: {}]   ;;  %s1089_s2 = inlined_call_operand.vmem [shape: f32[4,1], index: 2, kind: input, shape index: {}]   ;;  %s1090_s3 = inlined_call_operand.vmem [shape: bf16[4,72], index: 3, kind: input, shape index: {}]   ;;  %s1091_s4 = inlined_call_operand.vmem [shape: f32[4,1], index: 4, kind: input, shape index: {}]   ;;  %s1092_s5 = inlined_call_operand.vmem [shape: f32[2], index: 5, kind: input, shape index: {}]   ;;  %s1093_s6 = inlined_call_operand.hbm [shape: f32[2,4,256], index: 6, kind: output, shape index: {}]  }
   0x1   :  { %12 = vsyncpa [#allocation5], 0 }
   0x2   :  { %13 = vsyncpa [#allocation4], 0  ;;  %s795_s21 = smov [#allocation2]   ;;  %s40_s25 = sshll.u32 %s1092_s5, 4  ;;  %s41_s25 = int_to_ptr.vmem [resolvable:$true] %s40_s25 }
   0x3   :  { %s19_s22 = sshll.u32 %s795_s21, 4  ;;  %s733_s28 = scalar_lea.hbm %s1087_s0, 256  ;;  %s20_s22 = int_to_ptr.vmem [resolvable:$true] %s19_s22 }
   0x4   :  { %p734_p0 = scmp.ne.s32.totalorder %s1087_s0, %s733_s28  ;;  %p737_p1 = scmp.lt.u32.totalorder %s733_s28, %s1087_s0 }
   0x6   :  { %p739_p2 = pnand %p737_p1, %p734_p0 }
   0x8   :  { %742 = shalt.err (!%p739_p2)
}
   0x9   :  { %s743_s9 = scalar_lea.vmem %s20_s22, 256  ;;  %p748_p4 = scmp.lt.s32.totalorder %s20_s22, %s20_s22 }
   0xa   :  { %p744_p3 = scmp.ne.s32.totalorder %s20_s22, %s743_s9  ;;  %p749_p5 = scmp.lt.s32.totalorder %s743_s9, %s743_s9 }
   0xc   :  { %p750_p6 = por %p749_p5, %p748_p4 }
   0xe   :  { %p751_p7 = pnand %p750_p6, %p744_p3 }
  0x10   :  { %754 = shalt.err (!%p751_p7)
}
  0x11   :  { %s796_s5 = smov 128   ;;  %s797_s10 = smov 8  }
  0x12   :  { %25 = dma.hbm_to_vmem [thread:$0]  %s1087_s0, 256, %s20_s22, [#allocation3], %s796_s5, %s796_s5, %s797_s10  }
  0x13   :  { %s755_s13 = scalar_lea.vmem %s41_s25, 16  ;;  %p760_p9 = scmp.lt.s32.totalorder %s41_s25, %s41_s25 }
  0x14   :  { %p756_p8 = scmp.ne.s32.totalorder %s41_s25, %s755_s13  ;;  %p761_p10 = scmp.lt.s32.totalorder %s755_s13, %s755_s13 }
  0x16   :  { %p762_p11 = por %p761_p10, %p760_p9 }
  0x18   :  { %p763_p12 = pnand %p762_p11, %p756_p8 }
  0x1a   :  { %766 = shalt.err (!%p763_p12)
}
  0x1b   :  { %s798_s14 = smov [#allocation6]  }
  0x1c   :  { %43 = dma.vmem_to_smem %s41_s25, 16, %s798_s14, [#allocation5]  }
  0x1d   :  { %789 = dma.done.wait [#allocation3], 256  }
  0x1e   :  { %790 = vsyncadd [#allocation3], 4294967040 }
  0x1f   :  { %791 = dma.done.wait [#allocation5], 16  }
  0x20   :  { %792 = vsyncadd [#allocation5], 4294967280 }
  0x21   :  { %50 = sfence }
  0x22   :  { %v56_v0 = vld [vmem:[%s1088_s1] sm:$0xf]  ;;  %v799_v1 = vmov 0   ;;  %v58_v3 = vlaneseq  ;;  %v800_v4 = vmov 839922192   ;;  %s52_s18 = sld [smem:[#allocation6]] }
  0x23   :  { %602 = vset.pattern.permute.xlu0 %v799_v1  ;;  %306 = vmatprep.mubr.bf16.mxu0 %v799_v1  ;;  %v57_v2 = vld [vmem:[%s1089_s2] sm:$0xf]  ;;  %v95_v5 = vunpack.c.l.s4 %v800_v4  ;;  %v328_v12 = vld [vmem:[#allocation2 + $0x8] sm:$0xff]  ;;  %vm123_vm2 = vcmask 1043456   ;;  %s801_s1 = smov 17   ;;  %vm132_vm3 = vcmask 138240  }
  0x24   :  { %92 = vperm.xlu0 %602, %v56_v0   ;;  %493 = vmatprep.mubr.bf16.mxu1 %v799_v1  ;;  %v98_v7 = vshrl.u32 %v58_v3, 7  ;;  %v89_v11 = vld [vmem:[#allocation2] sm:$0xff]  ;;  %s802_s2 = smov 126   ;;  %s803_s19 = smov 127   ;;  %v59_v50 = vand.u32 127, %v58_v3  ;;  %vm222_vm5 = vcmask 1039360  }
  0x25   :  { %v96_v6 = vunpack.c.0.s8 %v95_v5  ;;  %s804_s20 = smov 110   ;;  %s805_s21 = smov 112   ;;  %v55_v49 = vld [vmem:[%s1091_s4] sm:$0xf]  ;;  %vm810_vm7 = vmmov 1   ;;  %vm157_vm10 = vcmask 1031168  }
  0x26   :  { %s806_s22 = smov 96   ;;  %s807_s23 = smov 111   ;;  %v60_v55 = vadd.s32 128, %v59_v50  ;;  %v65_v59 = vand.u32 15, %v59_v50  ;;  %vm170_vm11 = vcmask 916480  }
  0x27   :  { %v99_v8 = vsub.s32 %v96_v6, %v98_v7  ;;  %s808_s24 = smov 95   ;;  %s809_s25 = smov 94  }
  0x28   :  { %105 = vperm.xlu0 %602, %v57_v2   ;;  %v117_v17 = vstv %s52_s18  ;;  %v72_v58 = vand.u32 15, %v60_v55  ;;  %vm917_vm6 = vcmp.ge.s32.totalorder %v65_v59, 1  ;;  %vm953_vm13 = vcmp.le.s32.totalorder %v65_v59, 14  ;;  %s532_s29 = sld [smem:[#allocation6 + $0x1]] }
  0x29   :  { %vm934_vm9 = vmpackc.low %vm810_vm7, %vm917_vm6 }
  0x2a   :  { %vm913_vm4 = vcmp.ge.s32.totalorder %v72_v58, 1  ;;  %vm948_vm12 = vcmp.le.s32.totalorder %v72_v58, 14  ;;  %vm542_vm15 = vmpackc.low %vm917_vm6, %vm953_vm13  ;;  %vm244_vm6 = vcmask 777216  }
  0x2b   :  { %vm924_vm8 = vmpackc.low %vm810_vm7, %vm913_vm4 }
  0x2c   :  { %vm539_vm14 = vmpackc.low %vm913_vm4, %vm948_vm12 }
  0x2d   :  { %vm1016_vm4 = vmpackc.low %vm953_vm13, %vm810_vm7 }
  0xa3   :  { %v93_v9 = vpop.permute.xlu0 %92 }
  0xa4   :  { %v100_v10 = vrot.slane %v93_v9, %v99_v8 }
  0xa6   :  { %v102_v14 = vmul.f32 %v100_v10, %v89_v11  ;;  %v329_v15 = vmul.f32 %v328_v12, %v100_v10 }
  0xa7   :  { %v106_v13 = vpop.permute.xlu0 %105 }
  0xa8   :  { %v113_v16 = vrot.slane %v106_v13, %v99_v8 }
  0xaa   :  { %v115_v18 = vadd.f32 %v113_v16, %v102_v14  ;;  %v330_v19 = vadd.f32 %v329_v15, %v113_v16 }
  0xac   :  { %v118_v20 = vmul.f32 %v117_v17, %v115_v18  ;;  %vm331_vm0 = vcmp.ge.f32.partialorder %v330_v19, 0.0  ;;  %v332_v21 = vmul.f32 %v330_v19, %v117_v17  ;;  %vm116_vm1 = vcmp.ge.f32.partialorder %v115_v18, 0.0 }
  0xae   :  { %v119_v22 = vsel %vm116_vm1, %v115_v18, %v118_v20  ;;  %v333_v23 = vsel %vm331_vm0, %v330_v19, %v332_v21  ;;  %vm183_vm0 = vcmask 900096   ;;  %vm233_vm1 = vcmask 908288  }
  0xaf   :  { %v121_v24 = vcombine.high %v119_v22, %v119_v22  ;;  %v335_v25 = vcombine.high %v333_v23, %v333_v23  ;;  %v124_v26 = vsel %vm123_vm2, %v119_v22, 0.0  ;;  %v337_v30 = vsel %vm123_vm2, %v333_v23, 0.0  ;;  %v54_v23 = vld [vmem:[%s1090_s3] sm:$0x3]  ;;  %s811_s3 = smov [#allocation7]  }
  0xb0   :  { %s519_s30 = sshll.u32 %s811_s3, 4  ;;  %s520_s30 = int_to_ptr.vmem [resolvable:$true] %s519_s30 }
  0xb1   :  { %v125_v27 = vsel %vm123_vm2, %v121_v24, 0.0  ;;  %v338_v29 = vsel %vm123_vm2, %v335_v25, 0.0  ;;  %s767_s7 = scalar_lea.vmem %s520_s30, 256  ;;  %p772_p0 = scmp.lt.s32.totalorder %s520_s30, %s520_s30 }
  0xb2   :  { %v603_v28 = vpack.i.bf16 %v125_v27, %v124_v26  ;;  %v608_v31 = vpack.i.bf16 %v338_v29, %v337_v30  ;;  %p768_p13 = scmp.ne.s32.totalorder %s520_s30, %s767_s7  ;;  %p773_p1 = scmp.lt.s32.totalorder %s767_s7, %s767_s7 }
  0xb4   :  { %604 = vrot.lane.b32.xlu1 %v603_v28, %s801_s1  ;;  %p774_p2 = por %p773_p1, %p772_p0 }
  0xb6   :  { %p775_p3 = pnand %p774_p2, %p768_p13 }
  0xb8   :  { %609 = vrot.lane.b32.xlu1 %v608_v31, %s801_s1 }
 0x126   :  { %v605_v32 = vpop.permute.xlu1 %604 }
 0x127   :  { %v606_v33 = vunpack.i.l.bf16 %v605_v32  ;;  %v607_v40 = vunpack.i.h.bf16 %v605_v32 }
 0x129   :  { %v877_v36 = vsel %vm132_vm3, 0.0, %v606_v33  ;;  %v138_v44 = vsel %vm132_vm3, %v607_v40, 0.0  ;;  %v891_v45 = vsel %vm132_vm3, %v606_v33, %v607_v40 }
 0x12a   :  { %v610_v34 = vpop.permute.xlu1 %609  ;;  %v658_v46 = vpack.i.bf16 %v138_v44, %v891_v45  ;;  %v718_v47 = vpack.i.bf16 %v891_v45, %v877_v36 }
 0x12b   :  { %v611_v35 = vunpack.i.l.bf16 %v610_v34  ;;  %v612_v39 = vunpack.i.h.bf16 %v610_v34 }
 0x12d   :  { %v880_v37 = vsel %vm132_vm3, 0.0, %v611_v35  ;;  %v350_v41 = vsel %vm132_vm3, %v612_v39, 0.0  ;;  %v886_v42 = vsel %vm132_vm3, %v611_v35, %v612_v39  ;;  %vm1008_vm3 = vmpackc.low %vm948_vm12, %vm810_vm7  ;;  %vm209_vm7 = vcmask 769024  }
 0x12e   :  { %v618_v38 = vpack.i.bf16 %v880_v37, %v877_v36  ;;  %v653_v43 = vpack.i.bf16 %v350_v41, %v886_v42  ;;  %v723_v48 = vpack.i.bf16 %v880_v37, %v138_v44 }
 0x130   :  { %619 = vrot.lane.b32.xlu1 %v618_v38, %s802_s2  ;;  %614 = vrot.lane.b32.xlu0 %v618_v38, %s803_s19 }
 0x134   :  { %629 = vrot.lane.b32.xlu1 %v618_v38, %s804_s20  ;;  %624 = vrot.lane.b32.xlu0 %v618_v38, %s805_s21 }
 0x138   :  { %639 = vrot.lane.b32.xlu1 %v618_v38, %s806_s22  ;;  %634 = vrot.lane.b32.xlu0 %v618_v38, %s807_s23 }
 0x13c   :  { %654 = vrot.lane.b32.xlu1 %v653_v43, %s803_s19  ;;  %644 = vrot.lane.b32.xlu0 %v618_v38, %s808_s24 }
 0x140   :  { %659 = vrot.lane.b32.xlu1 %v658_v46, %s802_s2  ;;  %649 = vrot.lane.b32.xlu0 %v658_v46, %s803_s19 }
 0x144   :  { %669 = vrot.lane.b32.xlu1 %v653_v43, %s802_s2  ;;  %664 = vrot.lane.b32.xlu0 %v658_v46, %s805_s21 }
 0x148   :  { %679 = vrot.lane.b32.xlu1 %v658_v46, %s804_s20  ;;  %674 = vrot.lane.b32.xlu0 %v653_v43, %s805_s21 }
 0x14c   :  { %689 = vrot.lane.b32.xlu1 %v653_v43, %s804_s20  ;;  %684 = vrot.lane.b32.xlu0 %v658_v46, %s807_s23 }
 0x150   :  { %699 = vrot.lane.b32.xlu1 %v658_v46, %s806_s22  ;;  %694 = vrot.lane.b32.xlu0 %v653_v43, %s807_s23 }
 0x154   :  { %709 = vrot.lane.b32.xlu1 %v653_v43, %s806_s22  ;;  %704 = vrot.lane.b32.xlu0 %v658_v46, %s808_s24 }
 0x158   :  { %719 = vrot.lane.b32.xlu1 %v718_v47, %s809_s25  ;;  %714 = vrot.lane.b32.xlu0 %v653_v43, %s808_s24 }
 0x15c   :  { %729 = vrot.lane.b32.xlu1 %v653_v43, %s809_s25  ;;  %724 = vrot.lane.b32.xlu0 %v723_v48, %s809_s25 }
 0x160   :  { %261 = vperm.xlu0 %602, %v55_v49  }
 0x1a2   :  { %v901_v51 = vpop.permute.xlu1 %619  ;;  %v615_v52 = vpop.permute.xlu0 %614 }
 0x1a3   :  { %v617_v63 = vunpack.i.h.bf16 %v615_v52  ;;  %v616_v11 = vunpack.i.l.bf16 %v615_v52  ;;  %v621_v18 = vunpack.i.l.bf16 %v901_v51  ;;  %v622_v34 = vunpack.i.h.bf16 %v901_v51 }
 0x1a6   :  { %v903_v53 = vpop.permute.xlu1 %629  ;;  %v905_v54 = vpop.permute.xlu0 %624 }
 0x1a7   :  { %v626_v24 = vunpack.i.l.bf16 %v905_v54  ;;  %v627_v39 = vunpack.i.h.bf16 %v905_v54  ;;  %v631_v48 = vunpack.i.l.bf16 %v903_v53 }
 0x1aa   :  { %v907_v56 = vpop.permute.xlu1 %639  ;;  %v909_v57 = vpop.permute.xlu0 %634 }
 0x1ab   :  { %v636_v54 = vunpack.i.l.bf16 %v909_v57 }
 0x1ae   :  { %v655_v60 = vpop.permute.xlu1 %654  ;;  %v911_v61 = vpop.permute.xlu0 %644 }
 0x1af   :  { %v657_v0 = vunpack.i.h.bf16 %v655_v60  ;;  %v656_v1 = vunpack.i.l.bf16 %v655_v60 }
 0x1b1   :  { %v422_v4 = vsel %vm222_vm5, %v656_v1, %v657_v0  ;;  %v421_v5 = vsel %vm222_vm5, %v617_v63, %v656_v1 }
 0x1b2   :  { %v660_v6 = vpop.permute.xlu1 %659  ;;  %v650_v7 = vpop.permute.xlu0 %649  ;;  %v560_v8 = vpack.c.bf16 %v422_v4, %v886_v42  ;;  %v563_v10 = vpack.c.bf16 %v421_v5, %v880_v37  ;;  %v632_v5 = vunpack.i.h.bf16 %v903_v53 }
 0x1b3   :  { %v652_v12 = vunpack.i.h.bf16 %v650_v7  ;;  %v651_v13 = vunpack.i.l.bf16 %v650_v7  ;;  %v661_v14 = vunpack.i.l.bf16 %v660_v6  ;;  %v662_v15 = vunpack.i.h.bf16 %v660_v6 }
 0x1b4   :  { %561 = vmatprep.subr.msk.bf16.mxu1 %vm924_vm8, %v560_v8 }
 0x1b5   :  { %564 = vmatpush1.bf16.msk.msra.mxu1 %vm934_vm9, %v563_v10  ;;  %v224_v16 = vsel %vm222_vm5, %v651_v13, %v652_v12  ;;  %v223_v17 = vsel %vm222_vm5, %v616_v11, %v651_v13  ;;  %v158_v28 = vsel %vm157_vm10, %v621_v18, %v661_v14  ;;  %v159_v30 = vsel %vm157_vm10, %v661_v14, %v662_v15 }
 0x1b6   :  { %v670_v19 = vpop.permute.xlu1 %669  ;;  %v665_v20 = vpop.permute.xlu0 %664  ;;  %v534_v21 = vpack.c.bf16 %v224_v16, %v891_v45  ;;  %v537_v22 = vpack.c.bf16 %v223_v17, %v877_v36  ;;  %v637_v11 = vunpack.i.h.bf16 %v909_v57  ;;  %vm196_vm5 = vcmask 785408  }
 0x1b7   :  { %v667_v25 = vunpack.i.h.bf16 %v665_v20  ;;  %v666_v26 = vunpack.i.l.bf16 %v665_v20  ;;  %v671_v29 = vunpack.i.l.bf16 %v670_v19  ;;  %v672_v31 = vunpack.i.h.bf16 %v670_v19 }
 0x1b8   :  { %535 = vmatprep.subr.msk.bf16.mxu0 %vm924_vm8, %v534_v21  ;;  %v641_v57 = vunpack.i.l.bf16 %v907_v56 }
 0x1b9   :  { %v171_v32 = vsel %vm170_vm11, %v626_v24, %v666_v26  ;;  %v172_v33 = vsel %vm170_vm11, %v666_v26, %v667_v25  ;;  %538 = vmatpush1.bf16.msk.msra.mxu0 %vm934_vm9, %v537_v22  ;;  %v361_v42 = vsel %vm157_vm10, %v622_v34, %v671_v29  ;;  %v362_v44 = vsel %vm157_vm10, %v671_v29, %v672_v31 }
 0x1ba   :  { %v540_v35 = vpack.c.bf16 %v172_v33, %v159_v30  ;;  %v543_v36 = vpack.c.bf16 %v171_v32, %v158_v28  ;;  %v680_v37 = vpop.permute.xlu1 %679  ;;  %v675_v38 = vpop.permute.xlu0 %674  ;;  %v646_v24 = vunpack.i.l.bf16 %v911_v61  ;;  %v642_v34 = vunpack.i.h.bf16 %v907_v56 }
 0x1bb   :  { %v677_v40 = vunpack.i.h.bf16 %v675_v38  ;;  %v676_v41 = vunpack.i.l.bf16 %v675_v38  ;;  %v681_v43 = vunpack.i.l.bf16 %v680_v37  ;;  %v682_v45 = vunpack.i.h.bf16 %v680_v37 }
 0x1bc   :  { %541 = vmatprep.subr.msk.bf16.mxu0 %vm539_vm14, %v540_v35  ;;  %v647_v35 = vunpack.i.h.bf16 %v911_v61 }
 0x1bd   :  { %v373_v46 = vsel %vm170_vm11, %v627_v39, %v676_v41  ;;  %v374_v47 = vsel %vm170_vm11, %v676_v41, %v677_v40  ;;  %544 = vmatpush1.bf16.msk.msra.mxu0 %vm542_vm15, %v543_v36  ;;  %v184_v59 = vsel %vm183_vm0, %v631_v48, %v681_v43  ;;  %v185_v63 = vsel %vm183_vm0, %v681_v43, %v682_v45 }
 0x1be   :  { %v566_v49 = vpack.c.bf16 %v374_v47, %v362_v44  ;;  %v569_v50 = vpack.c.bf16 %v373_v46, %v361_v42  ;;  %v690_v51 = vpop.permute.xlu1 %689  ;;  %v685_v52 = vpop.permute.xlu0 %684 }
 0x1bf   :  { %v687_v55 = vunpack.i.h.bf16 %v685_v52  ;;  %v686_v58 = vunpack.i.l.bf16 %v685_v52  ;;  %v691_v60 = vunpack.i.l.bf16 %v690_v51  ;;  %v692_v0 = vunpack.i.h.bf16 %v690_v51 }
 0x1c0   :  { %567 = vmatprep.subr.msk.bf16.mxu1 %vm539_vm14, %v566_v49 }
 0x1c1   :  { %v234_v1 = vsel %vm233_vm1, %v636_v54, %v686_v58  ;;  %v235_v4 = vsel %vm233_vm1, %v686_v58, %v687_v55  ;;  %570 = vmatpush1.bf16.msk.msra.mxu1 %vm542_vm15, %v569_v50  ;;  %v385_v14 = vsel %vm183_vm0, %v632_v5, %v691_v60  ;;  %v386_v53 = vsel %vm183_vm0, %v691_v60, %v692_v0 }
 0x1c2   :  { %v546_v6 = vpack.c.bf16 %v185_v63, %v235_v4  ;;  %v549_v7 = vpack.c.bf16 %v184_v59, %v234_v1  ;;  %v700_v8 = vpop.permute.xlu1 %699  ;;  %v695_v10 = vpop.permute.xlu0 %694 }
 0x1c3   :  { %v697_v12 = vunpack.i.h.bf16 %v695_v10  ;;  %v696_v13 = vunpack.i.l.bf16 %v695_v10  ;;  %v701_v15 = vunpack.i.l.bf16 %v700_v8  ;;  %v702_v16 = vunpack.i.h.bf16 %v700_v8 }
 0x1c4   :  { %547 = vmatprep.subr.msk.bf16.mxu0 %vm1008_vm3, %v546_v6  ;;  %v317_v10 = vstv %s532_s29 }
 0x1c5   :  { %v431_v17 = vsel %vm233_vm1, %v637_v11, %v696_v13  ;;  %v432_v18 = vsel %vm233_vm1, %v696_v13, %v697_v12  ;;  %550 = vmatpush1.bf16.msk.msra.mxu0 %vm1016_vm4, %v549_v7  ;;  %v197_v28 = vsel %vm196_vm5, %v641_v57, %v701_v15  ;;  %v198_v30 = vsel %vm196_vm5, %v701_v15, %v702_v16 }
 0x1c6   :  { %v572_v19 = vpack.c.bf16 %v386_v53, %v432_v18  ;;  %v575_v20 = vpack.c.bf16 %v385_v14, %v431_v17  ;;  %v710_v21 = vpop.permute.xlu1 %709  ;;  %v705_v22 = vpop.permute.xlu0 %704 }
 0x1c7   :  { %v707_v25 = vunpack.i.h.bf16 %v705_v22  ;;  %v706_v26 = vunpack.i.l.bf16 %v705_v22  ;;  %v711_v29 = vunpack.i.l.bf16 %v710_v21  ;;  %v712_v31 = vunpack.i.h.bf16 %v710_v21 }
 0x1c8   :  { %573 = vmatprep.subr.msk.bf16.mxu1 %vm1008_vm3, %v572_v19 }
 0x1c9   :  { %v245_v32 = vsel %vm244_vm6, %v646_v24, %v706_v26  ;;  %v246_v33 = vsel %vm244_vm6, %v706_v26, %v707_v25  ;;  %576 = vmatpush1.bf16.msk.msra.mxu1 %vm1016_vm4, %v575_v20  ;;  %v397_v44 = vsel %vm196_vm5, %v642_v34, %v711_v29  ;;  %v398_v45 = vsel %vm196_vm5, %v711_v29, %v712_v31 }
 0x1ca   :  { %v552_v36 = vpack.c.bf16 %v246_v33, %v198_v30  ;;  %v555_v37 = vpack.c.bf16 %v245_v32, %v197_v28  ;;  %v720_v38 = vpop.permute.xlu1 %719  ;;  %v715_v39 = vpop.permute.xlu0 %714 }
 0x1cb   :  { %v722_v40 = vunpack.i.h.bf16 %v720_v38  ;;  %v721_v41 = vunpack.i.l.bf16 %v720_v38  ;;  %v717_v42 = vunpack.i.h.bf16 %v715_v39  ;;  %v716_v43 = vunpack.i.l.bf16 %v715_v39 }
 0x1cc   :  { %553 = vmatprep.subr.msk.bf16.mxu0 %vm924_vm8, %v552_v36 }
 0x1cd   :  { %v441_v46 = vsel %vm244_vm6, %v647_v35, %v716_v43  ;;  %v442_v56 = vsel %vm244_vm6, %v716_v43, %v717_v42  ;;  %556 = vmatpush1.bf16.msk.msra.mxu0 %vm934_vm9, %v555_v37  ;;  %v210_v61 = vsel %vm209_vm7, %v721_v41, %v722_v40 }
 0x1ce   :  { %v578_v47 = vpack.c.bf16 %v442_v56, %v398_v45  ;;  %v581_v48 = vpack.c.bf16 %v441_v46, %v397_v44  ;;  %v730_v49 = vpop.permute.xlu1 %729  ;;  %v725_v50 = vpop.permute.xlu0 %724  ;;  %v214_v51 = vsel %vm953_vm13, %v210_v61, 0.0 }
 0x1cf   :  { %v732_v52 = vunpack.i.h.bf16 %v730_v49  ;;  %v731_v54 = vunpack.i.l.bf16 %v730_v49  ;;  %v727_v55 = vunpack.i.h.bf16 %v725_v50  ;;  %v726_v58 = vunpack.i.l.bf16 %v725_v50 }
 0x1d0   :  { %579 = vmatprep.subr.msk.bf16.mxu1 %vm924_vm8, %v578_v47  ;;  %v257_v63 = vpack.c.bf16 %v214_v51, %v214_v51  ;;  %vm264_vm8 = vcmask 588800  }
 0x1d1   :  { %v410_v59 = vsel %vm209_vm7, %v731_v54, %v732_v52  ;;  %v211_v60 = vsel %vm209_vm7, %v722_v40, %v726_v58  ;;  %582 = vmatpush1.bf16.msk.msra.mxu1 %vm934_vm9, %v581_v48  ;;  %v409_v0 = vsel %vm209_vm7, %v727_v55, %v731_v54 }
 0x1d2   :  { %v414_v1 = vsel %vm948_vm12, %v410_v59, 0.0  ;;  %v215_v4 = vsel %vm948_vm12, %v211_v60, 0.0  ;;  %v413_v3 = vsel %vm953_vm13, %v409_v0, 0.0  ;;  %v269_v9 = vsel %vm123_vm2, %v257_v63, 0 }
 0x1d3   :  { %v454_v62 = vpack.c.bf16 %v414_v1, %v414_v1  ;;  %v258_v5 = vpack.c.bf16 %v215_v4, %v215_v4  ;;  %v453_v6 = vpack.c.bf16 %v413_v3, %v413_v3 }
 0x1d5   :  { %557 = vmatprep.subr.msk.bf16.mxu0 %vm123_vm2, %v258_v5  ;;  %583 = vmatprep.subr.msk.bf16.mxu1 %vm123_vm2, %v454_v62  ;;  %v456_v7 = vsel %vm123_vm2, %v453_v6, 0 }
 0x1d6   :  { %283 = vmatpush1.bf16.msra.mxu0 %v269_v9  ;;  %470 = vmatpush1.bf16.msra.mxu1 %v456_v7 }
 0x1d9   :  { %558 = vmatmul.mubr.msk.bf16.vlgmr.msra.gmra.mrb[0].mxu0 %vm264_vm8, %v54_v23  ;;  %584 = vmatmul.mubr.msk.bf16.vlgmr.msra.gmra.mrb[0].mxu1 %vm264_vm8, %v54_v23 }
 0x1df   :  { %v262_v27 = vpop.permute.xlu0 %261 }
 0x2ac   :  { %v308_v8 = vpop.f32.mrb[0].mxu0  ;;  %v495_v2 = vpop.f32.mrb[0].mxu1 }
 0x2ad   :  { %v309_v11 = vadd.f32 %v308_v8, %v262_v27  ;;  %v496_v12 = vadd.f32 %v495_v2, %v262_v27  ;;  %v310_v13 = vpop.f32.mrb[1].mxu0  ;;  %v497_v14 = vpop.f32.mrb[1].mxu1 }
 0x2ae   :  { %v311_v15 = vadd.f32 %v310_v13, %v262_v27  ;;  %v498_v53 = vadd.f32 %v497_v14, %v262_v27  ;;  %v312_v16 = vpop.f32.mrb[2].mxu0  ;;  %v499_v17 = vpop.f32.mrb[2].mxu1 }
 0x2af   :  { %vm315_vm2 = vcmp.ge.f32.partialorder %v309_v11, 0.0  ;;  %v318_v18 = vmul.f32 %v317_v10, %v309_v11  ;;  %vm502_vm9 = vcmp.ge.f32.partialorder %v496_v12, 0.0  ;;  %v504_v57 = vmul.f32 %v496_v12, %v317_v10  ;;  %v313_v19 = vpop.f32.mrb[3].mxu0  ;;  %v500_v20 = vpop.f32.mrb[3].mxu1 }
 0x2b0   :  { %vm316_vm10 = vcmp.ge.f32.partialorder %v311_v15, 0.0  ;;  %v319_v21 = vmul.f32 %v317_v10, %v311_v15  ;;  %vm503_vm11 = vcmp.ge.f32.partialorder %v498_v53, 0.0  ;;  %v505_v22 = vmul.f32 %v498_v53, %v317_v10 }
 0x2b1   :  { %v320_v24 = vsel %vm315_vm2, %v309_v11, %v318_v18  ;;  %v506_v25 = vsel %vm502_vm9, %v496_v12, %v504_v57 }
 0x2b2   :  { %v321_v26 = vsel %vm316_vm10, %v311_v15, %v319_v21  ;;  %v507_v28 = vsel %vm503_vm11, %v498_v53, %v505_v22 }
 0x2b3   :  { %v324_v29 = vcombine.low %v320_v24, %v321_v26  ;;  %v510_v30 = vcombine.low %v506_v25, %v507_v28 }
 0x2b5   :  { %326 = vst [vmem:[#allocation7] sm:$0xff] %v324_v29  ;;  %513 = vst [vmem:[#allocation7 + $0x8] sm:$0xff] %v510_v30 }
 0x2b6   :  { %778 = shalt.err (!%p775_p3)
}
 0x2b7   :  { %s779_s11 = scalar_lea.hbm %s1093_s6, 256 }
 0x2b8   :  { %p780_p4 = scmp.ne.s32.totalorder %s1093_s6, %s779_s11  ;;  %p783_p5 = scmp.lt.u32.totalorder %s779_s11, %s1093_s6 }
 0x2ba   :  { %p785_p6 = pnand %p783_p5, %p780_p4 }
 0x2bc   :  { %788 = shalt.err (!%p785_p6)
}
 0x2bd   :  { %525 = dma.vmem_to_hbm [thread:$0]  %s520_s30, 256, %s1093_s6, [#allocation4], %s796_s5, %s796_s5, %s797_s10  }
 0x2be   :  { %793 = dma.done.wait [#allocation4], 256  }
 0x2bf   :  { %794 = vsyncadd [#allocation4], 4294967040 }
 0x2c0   :  { %529 = vsyncpa [#allocation3], 1 }
 0x2c1   :  { %530 = vsyncpa [#allocation4], 1 }
 0x2c2   :  { %531 = vsyncpa [#allocation5], 1 }

</bundles_post_ra>
